<compile_context>
chip_gen: v7x
topology: tpu7x:2x2x1
jax: 0.10.0
libtpu: 0.0.40
codegen_flags: <defaults>
</compile_context>

<pallas_src>
import math

import jax
import jax.numpy as jnp
from jax.experimental import pallas as pl
from jax.experimental.pallas import tpu as pltpu


# -----------------------------------------------------------------------------
# Helpers
# -----------------------------------------------------------------------------
def _round_up(n, m):
    return ((n + m - 1) // m) * m


def _pad_to(a, shape):
    pads = [(0, s - d) for d, s in zip(a.shape, shape)]
    return jnp.pad(a, pads)


def _vmem_budget():
    """Generation-aware (budget, vmem_limit) in bytes."""
    try:
        cap = int(pltpu.get_tpu_info().vmem_capacity_bytes)
    except Exception:
        cap = 64 * 1024 * 1024  # conservative fallback (v7x-sized)
    headroom = min(cap // 4, 18 * 1024 * 1024)
    limit = max(cap - headroom, 32 * 1024 * 1024)      # 128 MiB -> 110 MiB, 64 MiB -> 48 MiB
    budget = max(limit - 8 * 1024 * 1024, 16 * 1024 * 1024)
    return budget, limit


def _pick_batch_tile(b, d, cp, hp, *, x_itemsize, cond_itemsize, out_itemsize,
                     weight_bytes, budget_bytes, tb_max=1024):
    """Batch tile (multiple of 8) computed directly from the VMEM budget.

    Accounts for: double-buffered x/cond input tiles and output tile, plus the in-kernel
    f32 intermediates (h_enc, h_dec and the f32 epilogue before the output cast).
    Balances tiles across the grid (small last-tile padding) and keeps >= 2 grid steps
    when possible so v7x's two TensorCores both receive work.
    """
    per_row = (2 * (x_itemsize * d + cond_itemsize * cp + out_itemsize * d)
               + 4 * (3 * hp + d))
    avail = budget_bytes - weight_bytes
    tb_fit = (avail // per_row) // 8 * 8 if avail > 0 else 0
    tb_cap = max(8, min(_round_up(tb_max, 8), tb_fit))
    rows = max(b, 8)
    min_tiles = 2 if rows >= 16 else 1
    n_tiles = max(pl.cdiv(rows, tb_cap), min_tiles)
    return min(_round_up(pl.cdiv(rows, n_tiles), 8), tb_cap)


# -----------------------------------------------------------------------------
# Pallas kernel: full encoder + decoder forward for one batch tile.
# -----------------------------------------------------------------------------
def _protrider_kernel(
    x_ref,      # (TB, D)    raw input rows (native dtype, unpadded)
    cond_ref,   # (TB, CP)   covariates, zero-padded to 128 lanes, param dtype
    we1x_ref,   # (D, HP)    encoder L1 weight, x part
    we1c_ref,   # (CP, HP)   encoder L1 weight, cond part
    be_ref,     # (1, HP)    f32 encoder bias  = -(prot_means @ We1x)
    wmid_ref,   # (HP, HP)   fused We2 @ Wd1z (latent bottleneck)
    wd1c_ref,   # (CP, HP)   decoder L1 weight, cond part
    wd2_ref,    # (HP, D)    decoder output weight
    bd_ref,     # (1, D)     f32 decoder bias (= prot_means)
    out_ref,    # (TB, D)    reconstruction
):
    w_dtype = we1x_ref.dtype
    xv = x_ref[...].astype(w_dtype)
    cv = cond_ref[...]

    # ---- encoder layer 1 (+ ReLU); prot_means shift folded into the f32 bias b_e ----
    h = jnp.dot(xv, we1x_ref[...], preferred_element_type=jnp.float32)
    h = h + jnp.dot(cv, we1c_ref[...], preferred_element_type=jnp.float32)
    h = h + be_ref[...]
    h = jnp.maximum(h, 0.0).astype(w_dtype)

    # ---- fused latent bottleneck (encoder L2 + decoder L1, no nonlinearity between) ----
    hd = jnp.dot(h, wmid_ref[...], preferred_element_type=jnp.float32)
    hd = hd + jnp.dot(cv, wd1c_ref[...], preferred_element_type=jnp.float32)
    hd = jnp.maximum(hd, 0.0).astype(w_dtype)

    # ---- decoder output layer, f32 epilogue with f32 bias (= prot_means) ----
    out = jnp.dot(hd, wd2_ref[...], preferred_element_type=jnp.float32) + bd_ref[...]
    out_ref[...] = out.astype(out_ref.dtype)


# -----------------------------------------------------------------------------
# Wrapper: weight folding/padding + batch-tiled pallas_call.
# -----------------------------------------------------------------------------
def protrider_forward(x, mask, cond, params, *, tb_max=1024, param_dtype=jnp.bfloat16):
    del mask  # unused when presence_absence=False (matches PyTorch forward)
    B, D = x.shape
    C = cond.shape[-1]
    H = params["We1x"].shape[1]

    HP = _round_up(H, 128)
    CP = _round_up(C, 128)

    f32 = jnp.float32
    w_itemsize = jnp.dtype(param_dtype).itemsize
    out_dtype = x.dtype

    # ---- generation-aware VMEM budget & batch tile ----
    budget, vmem_limit = _vmem_budget()
    weight_bytes = 2 * (w_itemsize * (D * HP + 2 * CP * HP + HP * HP + HP * D)
                        + 4 * (HP + D))  # pipeline double-buffers even constant blocks
    tb = _pick_batch_tile(B, D, CP, HP,
                          x_itemsize=x.dtype.itemsize,
                          cond_itemsize=w_itemsize,
                          out_itemsize=jnp.dtype(out_dtype).itemsize,
                          weight_bytes=weight_bytes,
                          budget_bytes=budget, tb_max=tb_max)
    num_tiles = pl.cdiv(B, tb)

    # ---- one-time wrapper-side weight folding (tiny vs. the streamed activations) ----
    be = -(params["prot_means"].astype(f32) @ params["We1x"].astype(f32))        # (1, H)
    W_mid = params["We2"].astype(f32) @ params["Wd1z"].astype(f32)               # (H, H)

    We1x_p = _pad_to(params["We1x"].astype(param_dtype), (D, HP))
    We1c_p = _pad_to(params["We1c"].astype(param_dtype), (CP, HP))
    be_p = _pad_to(be, (1, HP))                                                  # f32
    Wmid_p = _pad_to(W_mid.astype(param_dtype), (HP, HP))
    Wd1c_p = _pad_to(params["Wd1c"].astype(param_dtype), (CP, HP))
    Wd2_p = _pad_to(params["Wd2"].astype(param_dtype), (HP, D))
    bd_p = params["bd"].astype(f32)                                              # (1, D)

    # cond is tiny: pad its feature dim to 128 lanes and cast to the param dtype.
    cond_p = _pad_to(cond, (B, CP)).astype(param_dtype)

    # ---- advisory cost estimate ----
    flops = 2 * B * (D * HP + 2 * CP * HP + HP * HP + HP * D)
    bytes_accessed = (x.dtype.itemsize * B * D + w_itemsize * B * CP
                      + w_itemsize * (D * HP + 2 * CP * HP + HP * HP + HP * D)
                      + 4 * (HP + D)
                      + jnp.dtype(out_dtype).itemsize * B * D)
    cost = pl.CostEstimate(flops=int(flops), transcendentals=0,
                           bytes_accessed=int(bytes_accessed))

    out = pl.pallas_call(
        _protrider_kernel,
        out_shape=jax.ShapeDtypeStruct((B, D), out_dtype),
        grid_spec=pltpu.PrefetchScalarGridSpec(
            num_scalar_prefetch=0,
            grid=(num_tiles,),
            in_specs=[
                pl.BlockSpec((tb, D), lambda i: (i, 0)),     # x (streamed, native dtype)
                pl.BlockSpec((tb, CP), lambda i: (i, 0)),    # cond (lane-padded)
                pl.BlockSpec((D, HP), lambda i: (0, 0)),     # We1x (resident)
                pl.BlockSpec((CP, HP), lambda i: (0, 0)),    # We1c
                pl.BlockSpec((1, HP), lambda i: (0, 0)),     # b_e (f32)
                pl.BlockSpec((HP, HP), lambda i: (0, 0)),    # fused We2 @ Wd1z
                pl.BlockSpec((CP, HP), lambda i: (0, 0)),    # Wd1c
                pl.BlockSpec((HP, D), lambda i: (0, 0)),     # Wd2
                pl.BlockSpec((1, D), lambda i: (0, 0)),      # b_d (= prot_means, f32)
            ],
            out_specs=pl.BlockSpec((tb, D), lambda i: (i, 0)),
        ),
        compiler_params=pltpu.CompilerParams(
            dimension_semantics=("parallel",),
            vmem_limit_bytes=int(vmem_limit),
        ),
        cost_estimate=cost,
    )(x, cond_p, We1x_p, We1c_p, be_p, Wmid_p, Wd1c_p, Wd2_p, bd_p)

    return out


# -----------------------------------------------------------------------------
# Deterministic parameter construction (mimics nn.Linear default init and the
# module's __init__: hidden layers without bias; decoder output bias := prot_means).
# -----------------------------------------------------------------------------
def init_params(key, in_dim, latent_dim, h_dim, n_cov):
    def linear_weight(k, out_d, in_d):
        bound = 1.0 / math.sqrt(in_d)
        return jax.random.uniform(k, (out_d, in_d), jnp.float32, -bound, bound)

    k_pm, k_e1, k_e2, k_d1, k_d2 = jax.random.split(key, 5)

    prot_means = jax.random.normal(k_pm, (1, in_dim), jnp.float32)

    We1 = linear_weight(k_e1, h_dim, in_dim + n_cov)          # (H, D+C)
    We2 = linear_weight(k_e2, latent_dim, h_dim)              # (L, H)
    Wd1 = linear_weight(k_d1, h_dim, latent_dim + n_cov)      # (H, L+C)
    Wd2 = linear_weight(k_d2, in_dim, h_dim)                  # (D, H)
    bd = prot_means                                           # (1, D)

    We1_t = We1.T                                             # (D+C, H)
    Wd1_t = Wd1.T                                             # (L+C, H)
    return dict(
        prot_means=prot_means,
        We1x=We1_t[:in_dim],        # (D, H)
        We1c=We1_t[in_dim:],        # (C, H)
        We2=We2.T,                  # (H, L)
        Wd1z=Wd1_t[:latent_dim],    # (L, H)
        Wd1c=Wd1_t[latent_dim:],    # (C, H)
        Wd2=Wd2.T,                  # (H, D)
        bd=bd,                      # (1, D)
    )


# Pure-JAX reference (mirrors the PyTorch forward exactly for this config; unfused,
# so it also validates the W_mid fusion and the bias-folded prot_means shift).
def reference_forward(x, mask, cond, params):
    del mask
    xc = jnp.concatenate([x - params["prot_means"], cond], axis=-1)
    We1 = jnp.concatenate([params["We1x"], params["We1c"]], axis=0)
    h = jnp.maximum(xc @ We1, 0.0)
    z = h @ params["We2"]
    zc = jnp.concatenate([z, cond], axis=-1)
    Wd1 = jnp.concatenate([params["Wd1z"], params["Wd1c"]], axis=0)
    hd = jnp.maximum(zc @ Wd1, 0.0)
    return hd @ params["Wd2"] + params["bd"]


if __name__ == "__main__":
    B, D, L, H, C = 16, 32, 8, 32, 4   # batch, in_dim, latent_dim, h_dim, n_cov

    key = jax.random.PRNGKey(0)
    k_x, k_c, k_p, k_m = jax.random.split(key, 4)

    x = jax.random.normal(k_x, (B, D), jnp.float32)
    cond = jax.random.normal(k_c, (B, C), jnp.float32)
    mask = jax.random.bernoulli(k_m, 0.1, (B, D))   # unused (presence_absence=False)
    params = init_params(k_p, D, L, H, C)

    ref = reference_forward(x, mask, cond, params)

    # f32 parameters: validates the W_mid fusion + bias folding near-exactly.
    out_f32 = jax.block_until_ready(
        protrider_forward(x, mask, cond, params, param_dtype=jnp.float32))
    assert out_f32.shape == (B, D) and out_f32.dtype == jnp.float32
    assert jnp.allclose(out_f32, ref, atol=1e-4, rtol=1e-4), "f32 mismatch vs reference"

    # default bf16 parameters (f32 MXU accumulation, f32 prot_means bias epilogue).
    out_bf16 = jax.block_until_ready(protrider_forward(x, mask, cond, params))
    assert out_bf16.shape == (B, D) and out_bf16.dtype == jnp.float32
    assert jnp.allclose(out_bf16, ref, atol=5e-2, rtol=5e-2), "bf16 mismatch vs reference"

    # ragged batch (not a multiple of the batch tile): exercises the clamped last block.
    Br = 20
    xr = jax.random.normal(jax.random.PRNGKey(1), (Br, D), jnp.float32)
    cr = jax.random.normal(jax.random.PRNGKey(2), (Br, C), jnp.float32)
    mr = jnp.zeros((Br, D), bool)
    out_r = jax.block_until_ready(
        protrider_forward(xr, mr, cr, params, param_dtype=jnp.float32))
    ref_r = reference_forward(xr, mr, cr, params)
    assert jnp.allclose(out_r, ref_r, atol=1e-4, rtol=1e-4), "ragged-batch mismatch"

    print("KERNEL_OK")
</pallas_src>

<mosaic_0001>
module attributes {stable_mosaic.version = 11 : i64} {
  func.func @_protrider_kernel(%arg0: i32, %arg1: memref<8x32xf32, #tpu.memory_space<vmem>>, %arg2: memref<8x128xf32, #tpu.memory_space<vmem>>, %arg3: memref<32x128xf32, #tpu.memory_space<vmem>>, %arg4: memref<128x128xf32, #tpu.memory_space<vmem>>, %arg5: memref<1x128xf32, #tpu.memory_space<vmem>>, %arg6: memref<128x128xf32, #tpu.memory_space<vmem>>, %arg7: memref<128x128xf32, #tpu.memory_space<vmem>>, %arg8: memref<128x32xf32, #tpu.memory_space<vmem>>, %arg9: memref<1x32xf32, #tpu.memory_space<vmem>>, %arg10: memref<8x32xf32, #tpu.memory_space<vmem>>) attributes {dimension_semantics = [#tpu.dimension_semantics<parallel>], iteration_bounds = array<i64: 2>, scalar_prefetch = 0 : i64, scratch_operands = 0 : i64, tpu.core_type = #tpu.core_type<tc>, window_params = [{transform_indices = @transform_0, window_bounds = array<i64: 8, 32>}, {transform_indices = @transform_1, window_bounds = array<i64: 8, 128>}, {pipeline_mode = #tpu.pipeline_mode<synchronous>, transform_indices = @transform_2, window_bounds = array<i64: 32, 128>}, {pipeline_mode = #tpu.pipeline_mode<synchronous>, transform_indices = @transform_3, window_bounds = array<i64: 128, 128>}, {pipeline_mode = #tpu.pipeline_mode<synchronous>, transform_indices = @transform_4, window_bounds = array<i64: 1, 128>}, {pipeline_mode = #tpu.pipeline_mode<synchronous>, transform_indices = @transform_5, window_bounds = array<i64: 128, 128>}, {pipeline_mode = #tpu.pipeline_mode<synchronous>, transform_indices = @transform_6, window_bounds = array<i64: 128, 128>}, {pipeline_mode = #tpu.pipeline_mode<synchronous>, transform_indices = @transform_7, window_bounds = array<i64: 128, 32>}, {pipeline_mode = #tpu.pipeline_mode<synchronous>, transform_indices = @transform_8, window_bounds = array<i64: 1, 32>}, {transform_indices = @transform_9, window_bounds = array<i64: 8, 32>}]} {
    %c0 = arith.constant 0 : index
    %c0_0 = arith.constant 0 : index
    %0 = vector.load %arg1[%c0, %c0_0] : memref<8x32xf32, #tpu.memory_space<vmem>>, vector<8x32xf32>
    %c0_1 = arith.constant 0 : index
    %c0_2 = arith.constant 0 : index
    %1 = vector.load %arg2[%c0_1, %c0_2] : memref<8x128xf32, #tpu.memory_space<vmem>>, vector<8x128xf32>
    %c0_3 = arith.constant 0 : index
    %c0_4 = arith.constant 0 : index
    %2 = vector.load %arg3[%c0_3, %c0_4] : memref<32x128xf32, #tpu.memory_space<vmem>>, vector<32x128xf32>
    %cst = arith.constant dense<0.000000e+00> : vector<8x128xf32>
    %3 = tpu.matmul %0, %2, %cst {dimension_numbers = #tpu.dot_dimension_numbers<[1], [0], [0], [1], [0, 0, 1, 1], [], []>} : vector<8x32xf32>, vector<32x128xf32>, vector<8x128xf32> -> vector<8x128xf32>
    %c0_5 = arith.constant 0 : index
    %c0_6 = arith.constant 0 : index
    %4 = vector.load %arg4[%c0_5, %c0_6] : memref<128x128xf32, #tpu.memory_space<vmem>>, vector<128x128xf32>
    %cst_7 = arith.constant dense<0.000000e+00> : vector<8x128xf32>
    %5 = tpu.matmul %1, %4, %cst_7 {dimension_numbers = #tpu.dot_dimension_numbers<[1], [0], [0], [1], [0, 0, 1, 1], [], []>} : vector<8x128xf32>, vector<128x128xf32>, vector<8x128xf32> -> vector<8x128xf32>
    %6 = arith.addf %3, %5 : vector<8x128xf32>
    %c0_8 = arith.constant 0 : index
    %c0_9 = arith.constant 0 : index
    %7 = vector.load %arg5[%c0_8, %c0_9] : memref<1x128xf32, #tpu.memory_space<vmem>>, vector<1x128xf32>
    %8 = vector.broadcast %7 : vector<1x128xf32> to vector<8x128xf32>
    %9 = arith.addf %6, %8 : vector<8x128xf32>
    %cst_10 = arith.constant 0.000000e+00 : f32
    %10 = vector.broadcast %cst_10 : f32 to vector<8x128xf32>
    %11 = arith.maximumf %9, %10 : vector<8x128xf32>
    %c0_11 = arith.constant 0 : index
    %c0_12 = arith.constant 0 : index
    %12 = vector.load %arg6[%c0_11, %c0_12] : memref<128x128xf32, #tpu.memory_space<vmem>>, vector<128x128xf32>
    %cst_13 = arith.constant dense<0.000000e+00> : vector<8x128xf32>
    %13 = tpu.matmul %11, %12, %cst_13 {dimension_numbers = #tpu.dot_dimension_numbers<[1], [0], [0], [1], [0, 0, 1, 1], [], []>} : vector<8x128xf32>, vector<128x128xf32>, vector<8x128xf32> -> vector<8x128xf32>
    %c0_14 = arith.constant 0 : index
    %c0_15 = arith.constant 0 : index
    %14 = vector.load %arg7[%c0_14, %c0_15] : memref<128x128xf32, #tpu.memory_space<vmem>>, vector<128x128xf32>
    %cst_16 = arith.constant dense<0.000000e+00> : vector<8x128xf32>
    %15 = tpu.matmul %1, %14, %cst_16 {dimension_numbers = #tpu.dot_dimension_numbers<[1], [0], [0], [1], [0, 0, 1, 1], [], []>} : vector<8x128xf32>, vector<128x128xf32>, vector<8x128xf32> -> vector<8x128xf32>
    %16 = arith.addf %13, %15 : vector<8x128xf32>
    %cst_17 = arith.constant 0.000000e+00 : f32
    %17 = vector.broadcast %cst_17 : f32 to vector<8x128xf32>
    %18 = arith.maximumf %16, %17 : vector<8x128xf32>
    %c0_18 = arith.constant 0 : index
    %c0_19 = arith.constant 0 : index
    %19 = vector.load %arg8[%c0_18, %c0_19] : memref<128x32xf32, #tpu.memory_space<vmem>>, vector<128x32xf32>
    %cst_20 = arith.constant dense<0.000000e+00> : vector<8x32xf32>
    %20 = tpu.matmul %18, %19, %cst_20 {dimension_numbers = #tpu.dot_dimension_numbers<[1], [0], [0], [1], [0, 0, 1, 1], [], []>} : vector<8x128xf32>, vector<128x32xf32>, vector<8x32xf32> -> vector<8x32xf32>
    %c0_21 = arith.constant 0 : index
    %c0_22 = arith.constant 0 : index
    %21 = vector.load %arg9[%c0_21, %c0_22] : memref<1x32xf32, #tpu.memory_space<vmem>>, vector<1x32xf32>
    %22 = vector.broadcast %21 : vector<1x32xf32> to vector<8x32xf32>
    %23 = arith.addf %20, %22 : vector<8x32xf32>
    %c0_23 = arith.constant 0 : index
    %c0_24 = arith.constant 0 : index
    %24 = vector.load %arg10[%c0_23, %c0_24] : memref<8x32xf32, #tpu.memory_space<vmem>>, vector<8x32xf32>
    tpu.vector_store %arg10[%c0_23, %c0_24], %23 {strides = array<i32>} : memref<8x32xf32, #tpu.memory_space<vmem>>, vector<8x32xf32>,
    return
  }
  func.func @transform_0(%arg0: i32) -> (i32, i32) {
    %c0_i32 = arith.constant 0 : i32
    %c0_i32_0 = arith.constant 0 : i32
    return %arg0, %c0_i32 : i32, i32
  }
  func.func @transform_1(%arg0: i32) -> (i32, i32) {
    %c0_i32 = arith.constant 0 : i32
    %c0_i32_0 = arith.constant 0 : i32
    return %arg0, %c0_i32 : i32, i32
  }
  func.func @transform_2(%arg0: i32) -> (i32, i32) {
    %c0_i32 = arith.constant 0 : i32
    %c0_i32_0 = arith.constant 0 : i32
    %c0_i32_1 = arith.constant 0 : i32
    return %c0_i32, %c0_i32_0 : i32, i32
  }
  func.func @transform_3(%arg0: i32) -> (i32, i32) {
    %c0_i32 = arith.constant 0 : i32
    %c0_i32_0 = arith.constant 0 : i32
    %c0_i32_1 = arith.constant 0 : i32
    return %c0_i32, %c0_i32_0 : i32, i32
  }
  func.func @transform_4(%arg0: i32) -> (i32, i32) {
    %c0_i32 = arith.constant 0 : i32
    %c0_i32_0 = arith.constant 0 : i32
    %c0_i32_1 = arith.constant 0 : i32
    return %c0_i32, %c0_i32_0 : i32, i32
  }
  func.func @transform_5(%arg0: i32) -> (i32, i32) {
    %c0_i32 = arith.constant 0 : i32
    %c0_i32_0 = arith.constant 0 : i32
    %c0_i32_1 = arith.constant 0 : i32
    return %c0_i32, %c0_i32_0 : i32, i32
  }
  func.func @transform_6(%arg0: i32) -> (i32, i32) {
    %c0_i32 = arith.constant 0 : i32
    %c0_i32_0 = arith.constant 0 : i32
    %c0_i32_1 = arith.constant 0 : i32
    return %c0_i32, %c0_i32_0 : i32, i32
  }
  func.func @transform_7(%arg0: i32) -> (i32, i32) {
    %c0_i32 = arith.constant 0 : i32
    %c0_i32_0 = arith.constant 0 : i32
    %c0_i32_1 = arith.constant 0 : i32
    return %c0_i32, %c0_i32_0 : i32, i32
  }
  func.func @transform_8(%arg0: i32) -> (i32, i32) {
    %c0_i32 = arith.constant 0 : i32
    %c0_i32_0 = arith.constant 0 : i32
    %c0_i32_1 = arith.constant 0 : i32
    return %c0_i32, %c0_i32_0 : i32, i32
  }
  func.func @transform_9(%arg0: i32) -> (i32, i32) {
    %c0_i32 = arith.constant 0 : i32
    %c0_i32_0 = arith.constant 0 : i32
    return %arg0, %c0_i32 : i32, i32
  }
}

</mosaic_0001>

<bundles_post_ra>
// kernel: tpu_custom_call.1
= control target key start
LH: loop header
LB: loop body
LE: loop exit
PB: predicated region body
PF: predicated region fallthrough
CT: control target
= control target key end

     0   :  { %s2103_s0 = inlined_call_operand.hbm [shape: f32[16,32], index: 0, kind: input, shape index: {}]   ;;  %s2104_s1 = inlined_call_operand.hbm [shape: f32[16,128], index: 1, kind: input, shape index: {}]   ;;  %s2105_s2 = inlined_call_operand.vmem [shape: f32[32,128], index: 2, kind: input, shape index: {}]   ;;  %s2106_s3 = inlined_call_operand.vmem [shape: f32[128,128], index: 3, kind: input, shape index: {}]   ;;  %s2107_s4 = inlined_call_operand.vmem [shape: f32[1,128], index: 4, kind: input, shape index: {}]   ;;  %s2108_s5 = inlined_call_operand.hbm [shape: f32[128,128], index: 5, kind: input, shape index: {}]   ;;  %s2109_s6 = inlined_call_operand.hbm [shape: f32[128,128], index: 6, kind: input, shape index: {}]   ;;  %s2110_s7 = inlined_call_operand.vmem [shape: f32[128,32], index: 7, kind: input, shape index: {}]   ;;  %s2111_s8 = inlined_call_operand.vmem [shape: f32[1,32], index: 8, kind: input, shape index: {}]   ;;  %s2112_s9 = inlined_call_operand.hbm [shape: f32[16,32], index: 9, kind: output, shape index: {}]  }
   0x1   :  { %2121 = sst [smem:[#allocation20_spill]] %s2108_s5 }
   0x2   :  { %2122 = sst [smem:[#allocation21_spill]] %s2109_s6 }
   0x3   :  { %14 = vsyncpa [#allocation3], 0 }
   0x4   :  { %16 = vsyncpa [#allocation3 + $0x1], 0 }
   0x5   :  { %17 = vsyncpa [#allocation6], 0 }
   0x6   :  { %19 = vsyncpa [#allocation6 + $0x1], 0 }
   0x7   :  { %20 = vsyncpa [#allocation9], 0 }
   0x8   :  { %21 = vsyncpa [#allocation4], 0 }
   0x9   :  { %23 = vsyncpa [#allocation4 + $0x1], 0  ;;  %s1665_s30 = smov 0   ;;  %s1667_s10 = smov 0  }
   0xa   :  { %s1669_s11 = smov 0   ;;  %s1671_s12 = smov 0  }
   0xb LB: > { %2123 = sst [smem:[#allocation16_spill]] %s1599_s11  ;;  %s1686_s13 = sadd.s32 4294967295, %s1603_s12   ;;  %s1603_s12 = sphi %s1671_s12, %s2146_s12   ;;  %s1599_s11 = sphi %s1669_s11, %s2151_s11   ;;  %s1595_s10 = sphi %s1667_s10, %s2150_s10   ;;  %s1591_s30 = sphi %s1665_s30, %s2149_s30  }
   0xc   : > { %s982_s14 = sadd.s32 4294967294, %s1603_s12   ;;  %p49_p0 = scmp.ne.s32.totalorder %s1595_s10, %s1591_s30 }
   0xd   : > { %p2113_p1 = scmp.eq.s32.totalorder %s1686_s13, 0  ;;  %p252_p3 = scmp.eq.s32.totalorder %s982_s14, 1 }
   0xe   : > { %p983_p5 = scmp.ge.s32.totalorder %s1603_s12, 1  ;;  %p259_p7 = scmp.lt.s32.totalorder %s1603_s12, 3 }
   0xf   : > { %p1695_p4 = por %p2113_p1, %p49_p0  ;;  %p1700_p6 = por %p252_p3, %p49_p0 }
  0x10   : > { %p1705_p8 = pnand %p983_p5, %p259_p7  ;;  %s1605_s18 = smov [#allocation7]  }
  0x11   : > { %s2124_s15 = scalar_select %p1695_p4, 1, 0 }
  0x12   : > { %s2125_s16 = scalar_select %p1700_p6, 1, 0 }
  0x13   : > { %s2127_s17 = scalar_select %p1705_p8, 1, 0 }
  0x14   : > { %2126 = sst [smem:[#allocation17_spill]] %s2125_s16  ;;  %s280_s19 = sshll.u32 %s1605_s18, 4  ;;  %s1709_s19 = int_to_ptr.vmem [resolvable:$true] %s280_s19 }
  0x15   : > { %p1346_p9 = pneg %p1705_p8  ;;  %s1606_s21 = smov [#allocation8]  }
  0x16   : > { %s293_s22 = sshll.u32 %s1606_s21, 4  ;;  %s2129_s5 = sld [smem:[#allocation20_spill]]  ;;  %s1720_s22 = int_to_ptr.vmem [resolvable:$true] %s293_s22 }
  0x17   : > { %p1716_p11 = pnand %p1346_p9, %p2113_p1 }
  0x19   : > { %p1411_p13 = pneg %p1716_p11 }
  0x1c   : > { %s1409_s25 = scalar_lea.hbm %s2129_s5, 2048 }
  0x1d   : > { %p1410_p12 = scmp.ne.s32.totalorder %s2129_s5, %s1409_s25  ;;  %p1416_p5 = scmp.lt.u32.totalorder %s1409_s25, %s2129_s5 }
  0x1f   : > { %p1412_p0 = pnand %p1411_p13, %p1410_p12 }
  0x21   : > { %p1413_p3 = pneg %p1412_p0 }
  0x23   : > { %p1418_p7 = pnand %p1416_p5, %p1413_p3 }
  0x25   : > { %1421 = shalt.err (!%p1418_p7)
}
  0x26   : > { %s1422_s14 = scalar_lea.vmem %s1709_s19, 2048  ;;  %p1430_p2 = scmp.lt.s32.totalorder %s1709_s19, %s1709_s19 }
  0x27   : > { %p1423_p9 = scmp.ne.s32.totalorder %s1709_s19, %s1422_s14  ;;  %p1431_p12 = scmp.lt.s32.totalorder %s1422_s14, %s1422_s14 }
  0x29   : > { %p1425_p10 = pnand %p1423_p9, %p1411_p13  ;;  %p1432_p0 = por %p1431_p12, %p1430_p2 }
  0x2b   : > { %p1426_p1 = pneg %p1425_p10 }
  0x2d   : > { %p1433_p6 = pnand %p1432_p0, %p1426_p1 }
  0x2f   : > { %1436 = shalt.err (!%p1433_p6)
}
  0x30   : > { %s1607_s18 = smov 128   ;;  %s1608_s21 = smov 8  }
  0x31   : > { %1349 = dma.hbm_to_vmem [thread:$0]  (!%p1716_p11), %s2129_s5, 2048, %s1709_s19, [#allocation6], %s1607_s18, %s1607_s18, %s1608_s21  }
  0x32   : > { %s2130_s6 = sld [smem:[#allocation21_spill]] }
  0x38   : > { %s1437_s27 = scalar_lea.hbm %s2130_s6, 2048 }
  0x39   : > { %p1438_p2 = scmp.ne.s32.totalorder %s2130_s6, %s1437_s27  ;;  %p1444_p10 = scmp.lt.u32.totalorder %s1437_s27, %s2130_s6 }
  0x3b   : > { %p1440_p1 = pnand %p1438_p2, %p1411_p13 }
  0x3d   : > { %p1441_p6 = pneg %p1440_p1 }
  0x3f   : > { %p1446_p3 = pnand %p1444_p10, %p1441_p6 }
  0x41   : > { %1449 = shalt.err (!%p1446_p3)
}
  0x42   : > { %s1450_s19 = scalar_lea.vmem %s1720_s22, 2048  ;;  %p1458_p12 = scmp.lt.s32.totalorder %s1720_s22, %s1720_s22 }
  0x43   : > { %p1451_p5 = scmp.ne.s32.totalorder %s1720_s22, %s1450_s19  ;;  %p1459_p0 = scmp.lt.s32.totalorder %s1450_s19, %s1450_s19 }
  0x45   : > { %p1453_p7 = pnand %p1451_p5, %p1411_p13  ;;  %p1460_p2 = por %p1459_p0, %p1458_p12 }
  0x47   : > { %p1454_p9 = pneg %p1453_p7 }
  0x49   : > { %p1461_p1 = pnand %p1460_p2, %p1454_p9 }
  0x4b   : > { %1464 = shalt.err (!%p1461_p1)
}
  0x4c   : > { %1352 = dma.hbm_to_vmem [thread:$0]  (!%p1716_p11), %s2130_s6, 2048, %s1720_s22, [#allocation9], %s1607_s18, %s1607_s18, %s1608_s21  }
  0x4d   : > { %s1775_s24 = sadd.s32 1, %s1603_s12   ;;  %s36_s20 = sadd.s32 1, %s1599_s11 }
  0x4e   : > { %2131 = sst [smem:[#allocation18_spill]] %s1775_s24  ;;  %s33_s25 = ssub.s32 %s1603_s12, %s1775_s24 }
  0x4f   : > { %p43_p13 = scmp.ne.s32.totalorder %s1599_s11, %s1595_s10  ;;  %p34_p6 = scmp.eq.s32.totalorder %s33_s25, 0 }
  0x50   : > { %p44_p10 = scmp.eq.s32.totalorder %s1603_s12, 0  ;;  %p2132_p3 = scmp.eq.s32.totalorder %s1686_s13, 1 }
  0x51   : > { %p1366_p7 = scmp.lt.s32.totalorder %s1603_s12, 2  ;;  %s313_s28 = sand.u32 1, %s1599_s11  }
  0x52   : > { %p1785_p5 = por %p2132_p3, %p43_p13  ;;  %p45_p9 = por %p44_p10, %p43_p13 }
  0x53   : > { %s1791_s27 = scalar_select %p34_p6, %s1599_s11, %s36_s20  }
  0x54   : > { %s2133_s26 = scalar_select %p1785_p5, 1, 0 }
  0x55   : > { %2134 = sst [smem:[#allocation19_spill]] %s1791_s27  ;;  %s1794_s22 = sshll.u32 %s313_s28, 3 }
  0x56   : > { %s988_s18 = sshll.u32 %s1603_s12, 7  ;;  %s317_s19 = scalar_lea.vmem [#allocation2], %s1794_s22 }
  0x57   : > { %s1800_s14 = scalar_lea.hbm %s2103_s0, %s988_s18  ;;  %s324_s16 = sshll.u32 %s317_s19, 4  ;;  %s1803_s16 = int_to_ptr.vmem [resolvable:$true] %s324_s16 }
  0x58   : > { %p1805_p11 = pnand %p1366_p7, %p45_p9  ;;  %s1812_s21 = scalar_lea.hbm %s2104_s1, %s988_s18 }
  0x59   : > { %s331_s29 = sand.u32 1, %s1603_s12   ;;  %s314_s5 = scalar_lea.sflag [#allocation3], %s313_s28 }
  0x5a   : > { %s1465_s6 = scalar_lea.hbm %s1800_s14, 128  ;;  %p1467_p0 = pneg %p1805_p11 }
  0x5b   : > { %p1466_p12 = scmp.ne.s32.totalorder %s1800_s14, %s1465_s6  ;;  %s1470_s11 = scalar_lea.hbm %s2103_s0, 256 }
  0x5c   : > { %p1471_p13 = scmp.lt.u32.totalorder %s1800_s14, %s2103_s0  ;;  %p1472_p6 = scmp.lt.u32.totalorder %s1470_s11, %s1465_s6 }
  0x5d   : > { %p1468_p2 = pnand %p1467_p0, %p1466_p12  ;;  %p1474_p3 = scmp.lt.u32.totalorder %s1465_s6, %s1800_s14 }
  0x5e   : > { %p1473_p10 = por %p1472_p6, %p1471_p13 }
  0x5f   : > { %p1469_p1 = pneg %p1468_p2 }
  0x60   : > { %p1475_p7 = por %p1474_p3, %p1473_p10 }
  0x62   : > { %p1476_p9 = pnand %p1475_p7, %p1469_p1 }
  0x64   : > { %1479 = shalt.err (!%p1476_p9)
}
  0x65   : > { %s1480_s28 = scalar_lea.vmem %s1803_s16, 128  ;;  %s1609_s27 = smov [#allocation2]  }
  0x66   : > { %p1481_p12 = scmp.ne.s32.totalorder %s1803_s16, %s1480_s28  ;;  %s1485_s18 = sshll.u32 %s1609_s27, 4  ;;  %s1486_s18 = int_to_ptr.vmem [resolvable:$false] %s1485_s18 }
  0x67   : > { %s1487_s24 = scalar_lea.vmem %s1486_s18, 256  ;;  %p1488_p4 = scmp.lt.s32.totalorder %s1803_s16, %s1486_s18 }
  0x68   : > { %p1483_p2 = pnand %p1481_p12, %p1467_p0  ;;  %p1489_p13 = scmp.lt.s32.totalorder %s1487_s24, %s1480_s28 }
  0x6a   : > { %p1484_p5 = pneg %p1483_p2  ;;  %p1490_p6 = por %p1489_p13, %p1488_p4 }
  0x6c   : > { %p1491_p10 = pnand %p1490_p6, %p1484_p5 }
  0x6e   : > { %1494 = shalt.err (!%p1491_p10)
}
  0x6f   : > { %1356 = dma.hbm_to_vmem [thread:$0]  (!%p1805_p11), %s1800_s14, 128, %s1803_s16, %s314_s5  }
  0x70   : > { %s335_s6 = scalar_lea.vmem [#allocation5], %s1794_s22  ;;  %s332_s25 = scalar_lea.sflag [#allocation6], %s331_s29 }
  0x71   : > { %s342_s11 = sshll.u32 %s335_s6, 4  ;;  %s1495_s19 = scalar_lea.hbm %s1812_s21, 128  ;;  %s343_s11 = int_to_ptr.vmem [resolvable:$true] %s342_s11 }
  0x72   : > { %p1496_p4 = scmp.ne.s32.totalorder %s1812_s21, %s1495_s19  ;;  %s1500_s27 = scalar_lea.hbm %s2104_s1, 256 }
  0x73   : > { %p1501_p3 = scmp.lt.u32.totalorder %s1812_s21, %s2104_s1  ;;  %p1502_p7 = scmp.lt.u32.totalorder %s1500_s27, %s1495_s19 }
  0x74   : > { %p1498_p5 = pnand %p1496_p4, %p1467_p0  ;;  %p1504_p12 = scmp.lt.u32.totalorder %s1495_s19, %s1812_s21 }
  0x75   : > { %p1503_p9 = por %p1502_p7, %p1501_p3 }
  0x76   : > { %p1499_p1 = pneg %p1498_p5 }
  0x77   : > { %p1505_p2 = por %p1504_p12, %p1503_p9 }
  0x79   : > { %p1506_p13 = pnand %p1505_p2, %p1499_p1 }
  0x7b   : > { %1509 = shalt.err (!%p1506_p13)
}
  0x7c   : > { %s1510_s5 = scalar_lea.vmem %s343_s11, 128  ;;  %s1610_s22 = smov [#allocation5]  }
  0x7d   : > { %p1511_p6 = scmp.ne.s32.totalorder %s343_s11, %s1510_s5  ;;  %s1515_s14 = sshll.u32 %s1610_s22, 4  ;;  %s1516_s14 = int_to_ptr.vmem [resolvable:$false] %s1515_s14 }
  0x7e   : > { %s1517_s16 = scalar_lea.vmem %s1516_s14, 256  ;;  %p1518_p5 = scmp.lt.s32.totalorder %s343_s11, %s1516_s14 }
  0x7f   : > { %p1513_p10 = pnand %p1511_p6, %p1467_p0  ;;  %p1519_p8 = scmp.lt.s32.totalorder %s1517_s16, %s1510_s5 }
  0x81   : > { %p1514_p4 = pneg %p1513_p10  ;;  %p1520_p3 = por %p1519_p8, %p1518_p5 }
  0x83   : > { %p1521_p7 = pnand %p1520_p3, %p1514_p4 }
  0x85   : > { %1524 = shalt.err (!%p1521_p7)
}
  0x86   : > { %1359 = dma.hbm_to_vmem [thread:$0]  (!%p1805_p11), %s1812_s21, 128, %s343_s11, %s332_s25  }
  0x87   : > { %p2136_p1 = scmp.ne.s32.totalorder %s2127_s17, 0 }
  0x88   : > { %s1865_s29 = sand.u32 (!%p2136_p1), 1, %s1595_s10   ;;  %p2137_p8 = scmp.ne.s32.totalorder (!%p2136_p1), %s2124_s15, 0 }
  0x89   : > { %351 = sbr.rel (%p2136_p1) target bundleno = 850 (0x352), region = 56  ;;  %s1868_s6 = sshll.u32 (!%p2136_p1), %s1865_s29, 3 }
  0x8a   : > { %s354_s19 = scalar_lea.sflag (!%p2136_p1), [#allocation3], %s1865_s29  ;;  %s357_s20 = scalar_lea.vmem (!%p2136_p1), [#allocation2], %s1868_s6 }
  0x90   : > { %1570 = dma.done.wait (%p2137_p8), %s354_s19, 128  }
  0x91   : > { %1572 = vsyncadd (%p2137_p8), %s354_s19, 4294967168  ;;  %s362_s17 = sand.u32 1, %s1686_s13   ;;  %s366_s21 = scalar_lea.vmem [#allocation5], %s1868_s6 }
  0x92   : > { %s363_s23 = scalar_lea.sflag [#allocation6], %s362_s17 }
  0x93   : > { %1574 = dma.done.wait (%p2137_p8), %s363_s23, 128  }
  0x94   : > { %1576 = vsyncadd (%p2137_p8), %s363_s23, 4294967168  ;;  %p2138_p11 = scmp.eq.s32.totalorder %s1686_s13, 0 }
  0x96   : > { %1578 = dma.done.wait (%p2138_p11), [#allocation6], 2048   ;;  %p2139_p0 = pmov %p2138_p11 }
  0x98   : > { %1580 = vsyncadd (%p2139_p0), [#allocation6], 4294965248  ;;  %p2140_p9 = pmov %p2139_p0 }
  0x99   : > { %p2141_p12 = pmov %p2139_p0 }
  0x9a   : > { %1582 = dma.done.wait (%p2140_p9), [#allocation9], 2048  }
  0x9b   : > { %1584 = vsyncadd (%p2141_p12), [#allocation9], 4294965248  ;;  %v1611_v0 = vmov 0.0|0.0   ;;  %vm1612_vm0 = vmmov 0   ;;  %v1613_v1 = vmov 0.0   ;;  %v420_v2 = vld [vmem:[%s2106_s3] sm:$0xff] }
  0x9c   : > { %1228 = vmatprep.subr.bf16.mxu0 %v1611_v0  ;;  %1252 = vmatprep.subr.bf16.mxu1 %v1611_v0  ;;  %v421_v3 = vld [vmem:[%s2106_s3 + $0x8] sm:$0xff]  ;;  %v422_v4 = vld [vmem:[%s2106_s3 + $0x10] sm:$0xff]  ;;  %v423_v6 = vld [vmem:[%s2106_s3 + $0x18] sm:$0xff]  ;;  %vm506_vm1 = vcmask 261120   ;;  %s1001_s15 = sshll.u32 %s1686_s13, 7  ;;  %s413_s11 = scalar_lea.vmem [#allocation10], %s1868_s6 }
  0x9d   : > { %1120 = vmatprep.mubr.msk.f32.mxu1 %vm1612_vm0, %v1613_v1  ;;  %1109 = vmatprep.mubr.msk.f32.mxu0 %vm1612_vm0, %v1613_v1  ;;  %v1229_v5 = vpack.c.bf16 %v421_v3, %v420_v2  ;;  %v1232_v7 = vpack.c.bf16 %v423_v6, %v422_v4  ;;  %v424_v8 = vld [vmem:[%s2106_s3 + $0x20] sm:$0xff]  ;;  %v425_v9 = vld [vmem:[%s2106_s3 + $0x28] sm:$0xff]  ;;  %v418_v13 = vld [vmem:[%s2105_s2 + $0x10] sm:$0xff]  ;;  %s2058_s27 = scalar_lea.hbm %s2112_s9, %s1001_s15  ;;  %s857_s18 = scalar_lea.sflag [#allocation4], %s1865_s29 }
  0x9e   : > { %v416_v10 = vld [vmem:[%s2105_s2] sm:$0xff]  ;;  %v417_v11 = vld [vmem:[%s2105_s2 + $0x8] sm:$0xff]  ;;  %v419_v14 = vld [vmem:[%s2105_s2 + $0x18] sm:$0xff]  ;;  %v1235_v15 = vpack.c.bf16 %v425_v9, %v424_v8  ;;  %p2142_p13 = scmp.ne.s32.totalorder %s2133_s26, 0  ;;  %s1614_s13 = smov [#allocation10]  }
  0x9f   : > { %1230 = vmatpush3.bf16.msra.mxu0 %v1229_v5  ;;  %v1253_v12 = vpack.c.bf16 %v417_v11, %v416_v10  ;;  %v426_v16 = vld [vmem:[%s2106_s3 + $0x30] sm:$0xff]  ;;  %v1256_v17 = vpack.c.bf16 %v419_v14, %v418_v13  ;;  %v427_v18 = vld [vmem:[%s2106_s3 + $0x38] sm:$0xff]  ;;  %v605_v19 = vld [vmem:[#allocation8] sm:$0xff]  ;;  %s1529_s6 = sshll.u32 %s1614_s13, 4  ;;  %s1530_s6 = int_to_ptr.vmem [resolvable:$false] %s1529_s6 }
  0xa0   : > { %1231 = vmatprep.subr.bf16.mxu0 %v1611_v0  ;;  %v606_v20 = vld [vmem:[#allocation8 + $0x8] sm:$0xff]  ;;  %v1238_v21 = vpack.c.bf16 %v427_v18, %v426_v16  ;;  %v428_v22 = vld [vmem:[%s2106_s3 + $0x40] sm:$0xff]  ;;  %v607_v26 = vld [vmem:[#allocation8 + $0x10] sm:$0xff]  ;;  %s1531_s5 = scalar_lea.vmem %s1530_s6, 256 }
  0xa1   : > { %1254 = vmatpush3.bf16.msra.mxu1 %v1253_v12  ;;  %v414_v23 = vld [vmem:[%s357_s20] sm:$0xff]  ;;  %v1259_v24 = vpack.c.bf16 %v606_v20, %v605_v19  ;;  %v608_v27 = vld [vmem:[#allocation8 + $0x18] sm:$0xff]  ;;  %v430_v29 = vld [vmem:[%s2106_s3 + $0x50] sm:$0xff]  ;;  %s870_s20 = sshll.u32 %s413_s11, 4  ;;  %s2060_s20 = int_to_ptr.vmem [resolvable:$true] %s870_s20 }
  0xa2   : > { %1255 = vmatprep.subr.bf16.mxu1 %v1611_v0  ;;  %v429_v25 = vld [vmem:[%s2106_s3 + $0x48] sm:$0xff]  ;;  %v1262_v30 = vpack.c.bf16 %v608_v27, %v607_v26  ;;  %v431_v31 = vld [vmem:[%s2106_s3 + $0x58] sm:$0xff]  ;;  %v609_v32 = vld [vmem:[#allocation8 + $0x20] sm:$0xff]  ;;  %s1525_s24 = scalar_lea.vmem %s2060_s20, 128  ;;  %p1532_p4 = scmp.lt.s32.totalorder %s2060_s20, %s1530_s6 }
  0xa3   : > { %1233 = vmatpush3.bf16.msra.mxu0 %v1232_v7  ;;  %v1241_v28 = vpack.c.bf16 %v429_v25, %v428_v22  ;;  %v610_v33 = vld [vmem:[#allocation8 + $0x28] sm:$0xff]  ;;  %v1244_v34 = vpack.c.bf16 %v431_v31, %v430_v29  ;;  %v432_v35 = vld [vmem:[%s2106_s3 + $0x60] sm:$0xff]  ;;  %v611_v38 = vld [vmem:[#allocation8 + $0x30] sm:$0xff]  ;;  %p1526_p2 = scmp.ne.s32.totalorder %s2060_s20, %s1525_s24  ;;  %p1533_p5 = scmp.lt.s32.totalorder %s1531_s5, %s1525_s24 }
  0xa4   : > { %1234 = vmatprep.subr.bf16.mxu0 %v1611_v0  ;;  %v1265_v36 = vpack.c.bf16 %v610_v33, %v609_v32  ;;  %v433_v37 = vld [vmem:[%s2106_s3 + $0x68] sm:$0xff]  ;;  %v612_v39 = vld [vmem:[#allocation8 + $0x38] sm:$0xff]  ;;  %v434_v41 = vld [vmem:[%s2106_s3 + $0x70] sm:$0xff] }
  0xa5   : > { %1257 = vmatpush3.bf16.msra.mxu1 %v1256_v17  ;;  %v1247_v40 = vpack.c.bf16 %v433_v37, %v432_v35  ;;  %v1268_v42 = vpack.c.bf16 %v612_v39, %v611_v38  ;;  %v435_v43 = vld [vmem:[%s2106_s3 + $0x78] sm:$0xff]  ;;  %v613_v44 = vld [vmem:[#allocation8 + $0x40] sm:$0xff]  ;;  %v614_v45 = vld [vmem:[#allocation8 + $0x48] sm:$0xff]  ;;  %p1527_p6 = pnand %p1526_p2, %p2142_p13  ;;  %p1534_p3 = por %p1533_p5, %p1532_p4 }
  0xa6   : > { %1258 = vmatprep.subr.bf16.mxu1 %v1611_v0  ;;  %v1250_v46 = vpack.c.bf16 %v435_v43, %v434_v41  ;;  %v1271_v47 = vpack.c.bf16 %v614_v45, %v613_v44  ;;  %v615_v48 = vld [vmem:[#allocation8 + $0x50] sm:$0xff]  ;;  %v616_v49 = vld [vmem:[#allocation8 + $0x58] sm:$0xff]  ;;  %v617_v52 = vld [vmem:[#allocation8 + $0x60] sm:$0xff] }
  0xa7   : > { %1236 = vmatpush3.bf16.msra.mxu0 %v1235_v15  ;;  %v415_v50 = vld [vmem:[%s366_s21] sm:$0xff]  ;;  %v1274_v51 = vpack.c.bf16 %v616_v49, %v615_v48  ;;  %v618_v53 = vld [vmem:[#allocation8 + $0x68] sm:$0xff]  ;;  %v589_v58 = vld [vmem:[#allocation7] sm:$0xff]  ;;  %p1528_p10 = pneg %p1527_p6 }
  0xa8   : > { %1237 = vmatprep.subr.bf16.mxu0 %v1611_v0  ;;  %1121 = vmatmul.mubr.msk.f32.vlgmr.msra.gmra.mrb[0].mxu1 %vm506_vm1, %v414_v23  ;;  %v1277_v54 = vpack.c.bf16 %v618_v53, %v617_v52  ;;  %v619_v55 = vld [vmem:[#allocation8 + $0x70] sm:$0xff]  ;;  %v620_v56 = vld [vmem:[#allocation8 + $0x78] sm:$0xff]  ;;  %v590_v59 = vld [vmem:[#allocation7 + $0x8] sm:$0xff] }
  0xa9   : > { %1260 = vmatpush3.bf16.msra.mxu1 %v1259_v24  ;;  %1155 = vmatprep.mubr.msk.f32.mxu1 %vm1612_vm0, %v1613_v1  ;;  %v1280_v57 = vpack.c.bf16 %v620_v56, %v619_v55  ;;  %v1283_v60 = vpack.c.bf16 %v590_v59, %v589_v58  ;;  %v591_v61 = vld [vmem:[#allocation7 + $0x10] sm:$0xff]  ;;  %v592_v62 = vld [vmem:[#allocation7 + $0x18] sm:$0xff]  ;;  %v593_v2 = vld [vmem:[#allocation7 + $0x20] sm:$0xff]  ;;  %p1535_p7 = pnand %p1534_p3, %p1528_p10 }
  0xaa   : > { %1261 = vmatprep.subr.bf16.mxu1 %v1611_v0  ;;  %v1286_v63 = vpack.c.bf16 %v592_v62, %v591_v61  ;;  %v594_v3 = vld [vmem:[#allocation7 + $0x28] sm:$0xff]  ;;  %v595_v5 = vld [vmem:[#allocation7 + $0x30] sm:$0xff]  ;;  %v596_v6 = vld [vmem:[#allocation7 + $0x38] sm:$0xff] }
  0xab   : > { %1239 = vmatpush3.bf16.msra.mxu0 %v1238_v21  ;;  %v1289_v4 = vpack.c.bf16 %v594_v3, %v593_v2  ;;  %v1292_v7 = vpack.c.bf16 %v596_v6, %v595_v5  ;;  %v597_v8 = vld [vmem:[#allocation7 + $0x40] sm:$0xff]  ;;  %v598_v9 = vld [vmem:[#allocation7 + $0x48] sm:$0xff]  ;;  %v600_v11 = vld [vmem:[#allocation7 + $0x58] sm:$0xff] }
  0xac   : > { %1240 = vmatprep.subr.bf16.mxu0 %v1611_v0  ;;  %v1295_v10 = vpack.c.bf16 %v598_v9, %v597_v8  ;;  %v601_v13 = vld [vmem:[#allocation7 + $0x60] sm:$0xff]  ;;  %v602_v14 = vld [vmem:[#allocation7 + $0x68] sm:$0xff]  ;;  %v603_v16 = vld [vmem:[#allocation7 + $0x70] sm:$0xff] }
  0xad   : > { %1263 = vmatpush3.bf16.msra.mxu1 %v1262_v30  ;;  %v1301_v15 = vpack.c.bf16 %v602_v14, %v601_v13  ;;  %v604_v17 = vld [vmem:[#allocation7 + $0x78] sm:$0xff]  ;;  %v762_v19 = vld [vmem:[%s2110_s7] sm:$0xff]  ;;  %v763_v20 = vld [vmem:[%s2110_s7 + $0x8] sm:$0xff] }
  0xae   : > { %1264 = vmatprep.subr.bf16.mxu1 %v1611_v0  ;;  %v1304_v18 = vpack.c.bf16 %v604_v17, %v603_v16  ;;  %v764_v21 = vld [vmem:[%s2110_s7 + $0x10] sm:$0xff]  ;;  %v1307_v22 = vpack.c.bf16 %v763_v20, %v762_v19  ;;  %v765_v23 = vld [vmem:[%s2110_s7 + $0x18] sm:$0xff]  ;;  %v766_v25 = vld [vmem:[%s2110_s7 + $0x20] sm:$0xff] }
  0xaf   : > { %1242 = vmatpush3.bf16.msra.mxu0 %v1241_v28  ;;  %v1310_v24 = vpack.c.bf16 %v765_v23, %v764_v21  ;;  %v767_v26 = vld [vmem:[%s2110_s7 + $0x28] sm:$0xff]  ;;  %v768_v28 = vld [vmem:[%s2110_s7 + $0x30] sm:$0xff]  ;;  %v769_v29 = vld [vmem:[%s2110_s7 + $0x38] sm:$0xff] }
  0xb0   : > { %1243 = vmatprep.subr.bf16.mxu0 %v1611_v0  ;;  %v1313_v27 = vpack.c.bf16 %v767_v26, %v766_v25  ;;  %v1316_v30 = vpack.c.bf16 %v769_v29, %v768_v28  ;;  %v770_v31 = vld [vmem:[%s2110_s7 + $0x40] sm:$0xff]  ;;  %v771_v32 = vld [vmem:[%s2110_s7 + $0x48] sm:$0xff]  ;;  %v773_v35 = vld [vmem:[%s2110_s7 + $0x58] sm:$0xff] }
  0xb1   : > { %1266 = vmatpush3.bf16.msra.mxu1 %v1265_v36  ;;  %v1319_v33 = vpack.c.bf16 %v771_v32, %v770_v31  ;;  %v774_v37 = vld [vmem:[%s2110_s7 + $0x60] sm:$0xff]  ;;  %v775_v38 = vld [vmem:[%s2110_s7 + $0x68] sm:$0xff]  ;;  %v776_v48 = vld [vmem:[%s2110_s7 + $0x70] sm:$0xff] }
  0xb2   : > { %1267 = vmatprep.subr.bf16.mxu1 %v1611_v0  ;;  %v1325_v39 = vpack.c.bf16 %v775_v38, %v774_v37  ;;  %v998_v43 = vld [vmem:[%s2107_s4] ss:$0 sm:$0xff] }
  0xb3   : > { %1245 = vmatpush3.bf16.msra.mxu0 %v1244_v34  ;;  %v772_v34 = vld [vmem:[%s2110_s7 + $0x50] sm:$0xff]  ;;  %v999_v53 = vld [vmem:[%s2111_s8] ss:$0 sm:$0xff] }
  0xb4   : > { %1246 = vmatprep.subr.bf16.mxu0 %v1611_v0  ;;  %v1322_v36 = vpack.c.bf16 %v773_v35, %v772_v34 }
  0xb5   : > { %1269 = vmatpush3.bf16.msra.mxu1 %v1268_v42 }
  0xb6   : > { %1270 = vmatprep.subr.bf16.mxu1 %v1611_v0 }
  0xb7   : > { %1248 = vmatpush3.bf16.msra.mxu0 %v1247_v40 }
  0xb8   : > { %1249 = vmatprep.subr.bf16.mxu0 %v1611_v0 }
  0xb9   : > { %1272 = vmatpush3.bf16.msra.mxu1 %v1271_v47 }
  0xba   : > { %1273 = vmatprep.subr.bf16.mxu1 %v1611_v0 }
  0xbb   : > { %1251 = vmatpush3.bf16.msra.mxu0 %v1250_v46 }
  0xbc   : > { %1306 = vmatprep.subr.bf16.mxu0 %v1611_v0 }
  0xbd   : > { %1275 = vmatpush3.bf16.msra.mxu1 %v1274_v51 }
  0xbe   : > { %1110 = vmatmul.mubr.f32.vlgmr.msra.gmra.mrb[0].mxu0 %v415_v50  ;;  %1276 = vmatprep.subr.bf16.mxu1 %v1611_v0 }
  0xbf   : > { %1225 = vmatprep.mubr.msk.f32.mxu0 %vm1612_vm0, %v1613_v1  ;;  %1308 = vmatpush3.bf16.msra.mxu0 %v1307_v22 }
  0xc0   : > { %1309 = vmatprep.subr.bf16.mxu0 %v1611_v0 }
  0xc1   : > { %1278 = vmatpush3.bf16.msra.mxu1 %v1277_v54 }
  0xc2   : > { %1279 = vmatprep.subr.bf16.mxu1 %v1611_v0 }
  0xc3   : > { %1311 = vmatpush3.bf16.msra.mxu0 %v1310_v24 }
  0xc4   : > { %1312 = vmatprep.subr.bf16.mxu0 %v1611_v0 }
  0xc5   : > { %1281 = vmatpush3.bf16.msra.mxu1 %v1280_v57 }
  0xc6   : > { %1282 = vmatprep.subr.bf16.mxu1 %v1611_v0 }
  0xc7   : > { %1314 = vmatpush3.bf16.msra.mxu0 %v1313_v27 }
  0xc8   : > { %1156 = vmatmul.mubr.f32.vlgmr.msra.gmra.mrb[2].mxu1 %v415_v50  ;;  %1315 = vmatprep.subr.bf16.mxu0 %v1611_v0 }
  0xc9   : > { %1284 = vmatpush3.bf16.msra.mxu1 %v1283_v60  ;;  %1190 = vmatprep.mubr.msk.f32.mxu1 %vm1612_vm0, %v1613_v1  ;;  %v599_v1 = vld [vmem:[#allocation7 + $0x50] sm:$0xff] }
  0xca   : > { %1285 = vmatprep.subr.bf16.mxu1 %v1611_v0  ;;  %v1298_v12 = vpack.c.bf16 %v600_v11, %v599_v1 }
  0xcb   : > { %1317 = vmatpush3.bf16.msra.mxu0 %v1316_v30 }
  0xcc   : > { %1318 = vmatprep.subr.bf16.mxu0 %v1611_v0 }
  0xcd   : > { %1287 = vmatpush3.bf16.msra.mxu1 %v1286_v63 }
  0xce   : > { %1288 = vmatprep.subr.bf16.mxu1 %v1611_v0 }
  0xcf   : > { %1320 = vmatpush3.bf16.msra.mxu0 %v1319_v33 }
  0xd0   : > { %1321 = vmatprep.subr.bf16.mxu0 %v1611_v0 }
  0xd1   : > { %1290 = vmatpush3.bf16.msra.mxu1 %v1289_v4 }
  0xd2   : > { %1291 = vmatprep.subr.bf16.mxu1 %v1611_v0 }
  0xd3   : > { %1323 = vmatpush3.bf16.msra.mxu0 %v1322_v36 }
  0xd4   : > { %1324 = vmatprep.subr.bf16.mxu0 %v1611_v0 }
  0xd5   : > { %1293 = vmatpush3.bf16.msra.mxu1 %v1292_v7 }
  0xd6   : > { %1294 = vmatprep.subr.bf16.mxu1 %v1611_v0 }
  0xd7   : > { %1326 = vmatpush3.bf16.msra.mxu0 %v1325_v39 }
  0xd8   : > { %1327 = vmatprep.subr.bf16.mxu0 %v1611_v0 }
  0xd9   : > { %1296 = vmatpush3.bf16.msra.mxu1 %v1295_v10 }
  0xda   : > { %1297 = vmatprep.subr.bf16.mxu1 %v1611_v0 }
  0xdd   : > { %1299 = vmatpush3.bf16.msra.mxu1 %v1298_v12 }
  0xde   : > { %1300 = vmatprep.subr.bf16.mxu1 %v1611_v0 }
  0xe1   : > { %1302 = vmatpush3.bf16.msra.mxu1 %v1301_v15 }
  0xe2   : > { %1303 = vmatprep.subr.bf16.mxu1 %v1611_v0  ;;  %v777_v0 = vld [vmem:[%s2110_s7 + $0x78] sm:$0xff] }
  0xe3   : > { %v1328_v49 = vpack.c.bf16 %v777_v0, %v776_v48 }
  0xe5   : > { %1305 = vmatpush3.bf16.msra.mxu1 %v1304_v18  ;;  %1329 = vmatpush3.bf16.msra.mxu0 %v1328_v49 }
 0x17b   : > { %v576_v40 = vpop.f32.mrb[0].mxu1 }
 0x17c   : > { %v1122_v41 = vpop.f32.mrb[1].mxu1 }
 0x191   : > { %v502_v42 = vpop.f32.mrb[0].mxu0 }
 0x192   : > { %v577_v44 = vadd.f32 %v576_v40, %v502_v42  ;;  %v1111_v45 = vpop.f32.mrb[1].mxu0 }
 0x194   : > { %v587_v46 = vadd.f32 %v998_v43, %v577_v44 }
 0x196   : > { %v588_v47 = vmax.f32 %v587_v46, 0.0 }
 0x198   : > { %1191 = vmatmul.mubr.f32.vlgmr.msra.gmra.mrb[2].mxu1 %v588_v47 }
 0x26b   : > { %v757_v50 = vpop.f32.mrb[2].mxu1 }
 0x26c   : > { %v761_v51 = vmax.f32 %v757_v50, 0.0  ;;  %v1192_v52 = vpop.f32.mrb[3].mxu1 }
 0x26e   : > { %1226 = vmatmul.mubr.f32.vlgmr.msra.gmra.mrb[2].mxu0 %v761_v51 }
 0x341   : > { %v851_v54 = vpop.f32.mrb[2].mxu0 }
 0x342   : > { %v852_v55 = vadd.f32 %v999_v53, %v851_v54  ;;  %v1227_v56 = vpop.f32.mrb[3].mxu0 }
 0x344   : > { %855 = vst.msk [vmem:[%s413_s11] sm:$0xff] %vm506_vm1, %v852_v55 }
 0x345   : > { %1538 = shalt.err (!%p1535_p7)
}
 0x346   : > { %s1539_s29 = scalar_lea.hbm %s2058_s27, 128  ;;  %s1543_s16 = scalar_lea.hbm %s2112_s9, 256 }
 0x347   : > { %p1540_p1 = scmp.ne.s32.totalorder %s2058_s27, %s1539_s29  ;;  %p1544_p0 = scmp.lt.u32.totalorder %s2058_s27, %s2112_s9 }
 0x348   : > { %p1545_p9 = scmp.lt.u32.totalorder %s1543_s16, %s1539_s29  ;;  %p1547_p2 = scmp.lt.u32.totalorder %s1539_s29, %s2058_s27 }
 0x349   : > { %p1541_p8 = pnand %p1540_p1, %p2142_p13 }
 0x34a   : > { %p1546_p12 = por %p1545_p9, %p1544_p0 }
 0x34b   : > { %p1542_p11 = pneg %p1541_p8 }
 0x34c   : > { %p1548_p6 = por %p1547_p2, %p1546_p12 }
 0x34e   : > { %p1549_p10 = pnand %p1548_p6, %p1542_p11 }
 0x350   : > { %1552 = shalt.err (!%p1549_p10)
}
 0x351   : > { %1344 = dma.vmem_to_hbm [thread:$0]  (%p2142_p13), %s2060_s20, 128, %s2058_s27, %s857_s18  }
 0x352 PF: > { %s2143_s17 = sld [smem:[#allocation17_spill]]  ;;  %s882_s23 = sand.u32 1, %s1591_s30  }
 0x353   : > { %p2145_p5 = scmp.ge.s32.totalorder %s1603_s12, 2  ;;  %s883_s15 = scalar_lea.sflag [#allocation4], %s882_s23 }
 0x358   : > { %p2144_p4 = scmp.ne.s32.totalorder %s2143_s17, 0 }
 0x35a   : > { %p1361_p3 = pnand %p2145_p5, %p2144_p4 }
 0x35c   : > { %1586 = dma.done.wait (!%p1361_p3), %s883_s15, 128  }
 0x35d   : > { %1588 = vsyncadd (!%p1361_p3), %s883_s15, 4294967168  ;;  %s2146_s12 = sld [smem:[#allocation18_spill]]  ;;  %s2147_s11 = sld [smem:[#allocation16_spill]] }
 0x35e   : > { %s2148_s25 = sld [smem:[#allocation19_spill]]  ;;  %s2149_s30 = smov %s1595_s10 }
 0x363   : > { %p26_p7 = scmp.ge.s32.totalorder %s2146_s12, 4   ;;  %s2150_s10 = smov %s2147_s11 }
 0x364   : > { %s2151_s11 = smov %s2148_s25 }
 0x365   :  { %28 = sbr.rel (!%p26_p7) target bundleno = 11 (0xb), region = 122 }
 0x36c   :  { %888 = vsyncpa [#allocation3], 1 }
 0x36d   :  { %890 = vsyncpa [#allocation3 + $0x1], 1 }
 0x36e   :  { %891 = vsyncpa [#allocation6], 1 }
 0x36f   :  { %893 = vsyncpa [#allocation6 + $0x1], 1 }
 0x370   :  { %894 = vsyncpa [#allocation9], 1 }
 0x371   :  { %895 = vsyncpa [#allocation4], 1 }
 0x372   :  { %897 = vsyncpa [#allocation4 + $0x1], 1 }

</bundles_post_ra>
